<compile_context>
chip_gen: v5e
topology: v5e:2x2
jax: 0.10.0
libtpu: 0.0.40
codegen_flags: <defaults>
</compile_context>

<pallas_src>
import functools
import math

import jax
import jax.numpy as jnp
from jax.experimental import pallas as pl
from jax.experimental.pallas import tpu as pltpu


_SQRT1_2 = 1.0 / math.sqrt(2.0)


def _erf(x):
    """Elementwise erf via Abramowitz & Stegun 7.1.26 (max abs err ~1.5e-7).

    Uses only abs/mul/add/div/exp (VPU + EUP), so it lowers unconditionally in
    Mosaic; accuracy is at the f32 ulp level vs. exact erf (nn.GELU default).
    """
    a1, a2, a3, a4, a5 = (0.254829592, -0.284496736, 1.421413741,
                          -1.453152027, 1.061405429)
    p = 0.3275911
    ax = jnp.abs(x)
    t = 1.0 / (1.0 + p * ax)
    poly = ((((a5 * t + a4) * t + a3) * t + a2) * t + a1) * t
    y = 1.0 - poly * jnp.exp(-ax * ax)
    return jnp.where(x < 0, -y, y)


def _sigmoid(x):
    return 1.0 / (1.0 + jnp.exp(-x))


# ----------------------------------------------------------------------------
# Kernel 1: synthetic backbone + feature-map writeback + pooled partial sums.
# grid = (B, S, T)   ("parallel", "parallel", "arbitrary")
#   inputs : x    (B, Cin, HW_pad)   block (1, Cin, hw_tile)
#            bw   (Cf, Cin)          full   (1x1 conv weight, out-major)
#            bb   (Cf, 1)            full
#   outputs: feat (B, Cf, HW_pad)    block (1, Cf, hw_tile)   lane-dense
#            pool (B, S, Cf, 1)      block (1, 1, Cf, 1)      written at finalize
#   scratch: acc  (Cf, 128) VMEM     lane-aligned pooling accumulator
# ----------------------------------------------------------------------------
def _feature_pool_kernel(x_ref, bw_ref, bb_ref, feat_ref, pool_ref, acc_ref,
                         *, cin, hw_true, hw_pad, hw_tile):
    t = pl.program_id(2)

    @pl.when(t == 0)
    def _init():
        acc_ref[...] = jnp.zeros_like(acc_ref)

    x = x_ref[0]                        # (Cin, hw_tile)
    bw = bw_ref[...]                    # (Cf, Cin)
    bb = bb_ref[...]                    # (Cf, 1)
    cf = bw.shape[0]

    # Synthetic backbone: 1x1 conv + ReLU.
    if cin <= 8:
        # K is tiny (grayscale X-ray: Cin=1): outer product via VPU broadcast
        # multiply; the MXU would be ~1/256 utilized and only add FIFO latency.
        f = bw[:, 0:1] * x[0:1, :]
        for k in range(1, cin):
            f = f + bw[:, k:k + 1] * x[k:k + 1, :]
    else:
        f = jnp.dot(bw, x, preferred_element_type=jnp.float32)
    f = jnp.maximum(f + bb, 0.0)                          # (Cf, hw_tile)

    # Mask padded spatial columns (only compiled in when HW was padded) so
    # neither the pool nor the stored feature map sees ReLU(bb) garbage.
    if hw_pad != hw_true:
        col0 = (pl.program_id(1) * pl.num_programs(2) + t) * hw_tile
        lane = col0 + jax.lax.broadcasted_iota(jnp.int32, (cf, hw_tile), 1)
        f = jnp.where(lane < hw_true, f, 0.0)

    # Lane-dense NCHW-contiguous feature-map store.
    feat_ref[0] = f.astype(feat_ref.dtype)

    # Global-average-pool partials: lane-aligned VPU adds into (Cf, 128);
    # a few independent accumulators give ILP so the serial add chain stays
    # well under the DMA window even for large tiles.
    n_groups = hw_tile // 128
    n_acc = max(1, min(8, n_groups, 4096 // max(cf, 1)))
    parts = [f[:, a * 128:(a + 1) * 128] for a in range(n_acc)]
    for g in range(n_acc, n_groups):
        parts[g % n_acc] = parts[g % n_acc] + f[:, g * 128:(g + 1) * 128]
    tot = parts[0]
    for a in range(1, n_acc):
        tot = tot + parts[a]
    acc_ref[...] += tot

    @pl.when(t == pl.num_programs(2) - 1)
    def _finalize():
        # Single cross-lane (XLU) reduce, once per (batch, split) group.
        pool_ref[0, 0] = jnp.sum(acc_ref[...], axis=1, keepdims=True)


# ----------------------------------------------------------------------------
# Kernel 2: EnhancedClassifier head, row-oriented (lane-dense intermediates).
# Single grid step; all arrays resident in VMEM.  BN already folded into w1/b1.
# ----------------------------------------------------------------------------
def _head_kernel(p_ref, w1_ref, b1_ref, w2_ref, b2_ref,
                 wa1_ref, ba1_ref, wa2_ref, ba2_ref, w3_ref, b3_ref,
                 logits_ref, *, inv_hw):
    p = p_ref[...] * inv_hw                               # (B, Cf) pooled mean
    # Linear(Cf -> hidden*2) with BatchNorm1d (eval) pre-folded.
    h = jnp.dot(p, w1_ref[...], preferred_element_type=jnp.float32) + b1_ref[...]
    # GELU (exact erf form - nn.GELU default).
    h = 0.5 * h * (1.0 + _erf(h * _SQRT1_2))
    # Dropout: identity in eval mode.
    # Linear(hidden*2 -> hidden)
    h = jnp.dot(h, w2_ref[...], preferred_element_type=jnp.float32) + b2_ref[...]
    # MedicalAttentionGate: h * sigmoid(Linear(sigmoid(Linear(h))))
    a = _sigmoid(jnp.dot(h, wa1_ref[...], preferred_element_type=jnp.float32)
                 + ba1_ref[...])
    a = _sigmoid(jnp.dot(a, wa2_ref[...], preferred_element_type=jnp.float32)
                 + ba2_ref[...])
    h = h * a
    # Dropout(rate/2): identity in eval mode.
    # Linear(hidden -> num_classes)
    logits = jnp.dot(h, w3_ref[...], preferred_element_type=jnp.float32) + b3_ref[...]
    logits_ref[...] = logits.astype(logits_ref.dtype)


def _pick_hw_tile(hw_pad, cin, cf, budget_bytes):
    """Largest 128-multiple divisor of hw_pad whose per-step VMEM footprint
    (double-buffered x & feat blocks + the (Cf, hw_tile) f32 intermediate)
    fits the byte budget."""
    bytes_per_lane = 4 * (2 * (cin + cf) + cf)
    cap = max(128, (budget_bytes // bytes_per_lane) // 128 * 128)
    t = min(hw_pad, cap)
    t = max(128, (t // 128) * 128)
    while t > 128 and hw_pad % t != 0:
        t -= 128
    return t


def pneumonia_model_cam_forward(x_nchw, params, num_classes=1, *,
                                feat_dtype=jnp.float32,
                                vmem_tile_budget_bytes=12 * 1024 * 1024):
    """Returns (logits, features_map) just like PneumoniaModelCAM.forward.

    feat_dtype=jnp.bfloat16 halves the feature-map writeback (the kernel's
    bandwidth bottleneck) if the CAM consumer tolerates it; default f32 keeps
    parity with the PyTorch module.
    """
    B, Cin, H, W = x_nchw.shape
    HW = H * W
    Cf = params["backbone_w"].shape[0]
    NC = params["w3"].shape[0]

    # --- spatial layout: (B, Cin, HW) padded to a lane multiple --------------
    HW_pad = ((HW + 127) // 128) * 128
    x_rows = x_nchw.reshape(B, Cin, HW)                   # free reshape
    if HW_pad != HW:
        x_rows = jnp.pad(x_rows, ((0, 0), (0, 0), (0, HW_pad - HW)))

    hw_tile = _pick_hw_tile(HW_pad, Cin, Cf, vmem_tile_budget_bytes)
    n_tiles = HW_pad // hw_tile

    # --- spatial split so small batches still fill both v7x TensorCores -----
    if B >= 2 or n_tiles < 2:
        num_splits = 1
    else:
        num_splits = 2 if n_tiles % 2 == 0 else 1
    tiles_per_split = n_tiles // num_splits

    k1 = functools.partial(_feature_pool_kernel, cin=Cin, hw_true=HW,
                           hw_pad=HW_pad, hw_tile=hw_tile)

    feat, pool_parts = pl.pallas_call(
        k1,
        out_shape=(
            jax.ShapeDtypeStruct((B, Cf, HW_pad), feat_dtype),
            jax.ShapeDtypeStruct((B, num_splits, Cf, 1), jnp.float32),
        ),
        grid_spec=pltpu.PrefetchScalarGridSpec(
            num_scalar_prefetch=0,
            grid=(B, num_splits, tiles_per_split),
            in_specs=[
                pl.BlockSpec((1, Cin, hw_tile),
                             lambda b, s, t: (b, 0, s * tiles_per_split + t)),
                pl.BlockSpec((Cf, Cin), lambda b, s, t: (0, 0)),
                pl.BlockSpec((Cf, 1), lambda b, s, t: (0, 0)),
            ],
            out_specs=[
                pl.BlockSpec((1, Cf, hw_tile),
                             lambda b, s, t: (b, 0, s * tiles_per_split + t)),
                pl.BlockSpec((1, 1, Cf, 1), lambda b, s, t: (b, s, 0, 0)),
            ],
            scratch_shapes=[pltpu.VMEM((Cf, 128), jnp.float32)],
        ),
        compiler_params=pltpu.CompilerParams(
            dimension_semantics=("parallel", "parallel", "arbitrary"),
            vmem_limit_bytes=32 * 1024 * 1024),
    )(x_rows, params["backbone_w"], params["backbone_b"])

    # --- combine split partials (a few KB) and prepare row-oriented weights --
    pooled_sums = pool_parts.reshape(B, num_splits, Cf).sum(axis=1)   # (B, Cf)

    eps = 1e-5
    scale = (params["bn_gamma"] * jax.lax.rsqrt(params["bn_var"] + eps)).reshape(-1)
    shift = params["bn_beta"].reshape(-1) - params["bn_mean"].reshape(-1) * scale
    w1f = (params["w1"] * scale[:, None]).T               # (Cf, HE) with BN folded
    b1f = (scale * params["b1"].reshape(-1) + shift).reshape(1, -1)
    w2t, b2r = params["w2"].T, params["b2"].reshape(1, -1)
    wa1t, ba1r = params["wa1"].T, params["ba1"].reshape(1, -1)
    wa2t, ba2r = params["wa2"].T, params["ba2"].reshape(1, -1)
    w3t, b3r = params["w3"].T, params["b3"].reshape(1, -1)

    logits = pl.pallas_call(
        functools.partial(_head_kernel, inv_hw=1.0 / HW),
        out_shape=jax.ShapeDtypeStruct((B, NC), jnp.float32),
    )(pooled_sums, w1f, b1f, w2t, b2r, wa1t, ba1r, wa2t, ba2r, w3t, b3r)

    if HW_pad != HW:
        feat = feat[:, :, :HW]          # extra copy only when HW was padded
    features_map = feat.reshape(B, Cf, H, W)               # NCHW
    if num_classes == 1:
        return logits[:, 0], features_map
    return logits, features_map


# ----------------------------------------------------------------------------
# Parameter construction (deterministic, matching the module's shapes / init
# style: weights ~ N(0, gelu_gain / sqrt(fan_in)), biases = 0.1).
# Weights stored PyTorch nn.Linear style: (out_features, in_features);
# biases / BN params stored as (out_features, 1) columns.
# ----------------------------------------------------------------------------
def make_params(key, *, in_channels, num_backbone_out_features,
                hidden_dim, num_classes):
    gelu_gain = 1.7  # empirical gain std(x)/std(gelu(x)) ~ 1.7 (module caches it)
    hidden_exp = hidden_dim * 2
    bottleneck = max(1, hidden_dim // 4)

    keys = jax.random.split(key, 8)

    def lin(k, fan_in, fan_out):
        std = gelu_gain / math.sqrt(fan_in) if fan_in > 0 else 0.02
        w = std * jax.random.normal(k, (fan_out, fan_in), jnp.float32)
        b = jnp.full((fan_out, 1), 0.1, jnp.float32)
        return w, b

    bw = 0.5 * jax.random.normal(
        keys[0], (num_backbone_out_features, in_channels), jnp.float32)
    bb = jnp.zeros((num_backbone_out_features, 1), jnp.float32)

    w1, b1 = lin(keys[1], num_backbone_out_features, hidden_exp)
    w2, b2 = lin(keys[2], hidden_exp, hidden_dim)
    wa1, ba1 = lin(keys[3], hidden_dim, bottleneck)
    wa2, ba2 = lin(keys[4], bottleneck, hidden_dim)
    w3, b3 = lin(keys[5], hidden_dim, num_classes)

    return dict(
        backbone_w=bw, backbone_b=bb,
        w1=w1, b1=b1,
        bn_gamma=jnp.ones((hidden_exp, 1), jnp.float32),
        bn_beta=jnp.zeros((hidden_exp, 1), jnp.float32),
        bn_mean=jnp.zeros((hidden_exp, 1), jnp.float32),
        bn_var=jnp.ones((hidden_exp, 1), jnp.float32),
        w2=w2, b2=b2,
        wa1=wa1, ba1=ba1, wa2=wa2, ba2=ba2,
        w3=w3, b3=b3,
    )


def _reference_forward(x, params, num_classes):
    """Pure-JAX reference with identical (eval-mode) semantics."""
    bw, bb = params["backbone_w"], params["backbone_b"]
    feats = jnp.maximum(
        jnp.einsum('oi,bihw->bohw', bw, x) + bb.reshape(1, -1, 1, 1), 0.0)
    pooled = feats.mean(axis=(2, 3))
    eps = 1e-5
    scale = (params["bn_gamma"] * jax.lax.rsqrt(params["bn_var"] + eps)).reshape(-1)
    shift = params["bn_beta"].reshape(-1) - params["bn_mean"].reshape(-1) * scale
    h = pooled @ params["w1"].T + params["b1"].reshape(-1)
    h = h * scale + shift
    h = 0.5 * h * (1.0 + jax.lax.erf(h * _SQRT1_2))
    h = h @ params["w2"].T + params["b2"].reshape(-1)
    a = jax.nn.sigmoid(h @ params["wa1"].T + params["ba1"].reshape(-1))
    a = jax.nn.sigmoid(a @ params["wa2"].T + params["ba2"].reshape(-1))
    h = h * a
    logits = h @ params["w3"].T + params["b3"].reshape(-1)
    if num_classes == 1:
        return logits.squeeze(-1), feats
    return logits, feats


if __name__ == "__main__":
    # Small shapes consistent with the module's forward contract
    # (default in_channels=1: grayscale chest X-ray).
    B, Cin, H, W = 2, 1, 16, 16
    num_backbone_out_features = 32
    classifier_hidden_dim = 32
    num_classes = 1

    key = jax.random.PRNGKey(0)
    k_x, k_p = jax.random.split(key)
    x = jax.random.normal(k_x, (B, Cin, H, W), jnp.float32)

    params = make_params(
        k_p,
        in_channels=Cin,
        num_backbone_out_features=num_backbone_out_features,
        hidden_dim=classifier_hidden_dim,
        num_classes=num_classes,
    )

    logits, features_map = pneumonia_model_cam_forward(x, params, num_classes)
    logits = jax.block_until_ready(logits)
    features_map = jax.block_until_ready(features_map)

    assert logits.shape == (B,)
    assert features_map.shape == (B, num_backbone_out_features, H, W)

    ref_logits, ref_feats = _reference_forward(x, params, num_classes)
    assert float(jnp.max(jnp.abs(features_map - ref_feats))) < 1e-4
    assert float(jnp.max(jnp.abs(logits - ref_logits))) < 1e-3

    print("KERNEL_OK")
</pallas_src>

<mosaic_0001>
module attributes {stable_mosaic.version = 11 : i64} {
  func.func @_feature_pool_kernel(%arg0: i32, %arg1: i32, %arg2: i32, %arg3: memref<1x1x256xf32, #tpu.memory_space<vmem>>, %arg4: memref<32x1xf32, #tpu.memory_space<vmem>>, %arg5: memref<32x1xf32, #tpu.memory_space<vmem>>, %arg6: memref<1x32x256xf32, #tpu.memory_space<vmem>>, %arg7: memref<1x1x32x1xf32, #tpu.memory_space<vmem>>, %arg8: memref<32x128xf32, #tpu.memory_space<vmem>>) attributes {dimension_semantics = [#tpu.dimension_semantics<parallel>, #tpu.dimension_semantics<parallel>, #tpu.dimension_semantics<arbitrary>], iteration_bounds = array<i64: 2, 1, 1>, scalar_prefetch = 0 : i64, scratch_operands = 1 : i64, tpu.core_type = #tpu.core_type<tc>, window_params = [{transform_indices = @transform_0, window_bounds = array<i64: 1, 1, 256>}, {pipeline_mode = #tpu.pipeline_mode<synchronous>, transform_indices = @transform_1, window_bounds = array<i64: 32, 1>}, {pipeline_mode = #tpu.pipeline_mode<synchronous>, transform_indices = @transform_2, window_bounds = array<i64: 32, 1>}, {transform_indices = @transform_3, window_bounds = array<i64: 1, 32, 256>}, {transform_indices = @transform_4, window_bounds = array<i64: 1, 1, 32, 1>}]} {
    %c0_i32 = arith.constant 0 : i32
    %0 = arith.cmpi eq, %arg2, %c0_i32 : i32
    %1 = arith.extui %0 : i1 to i32
    %c0_i32_0 = arith.constant 0 : i32
    %2 = arith.cmpi ne, %1, %c0_i32_0 : i32
    scf.if %2 {
      %cst_16 = arith.constant 0.000000e+00 : f32
      %26 = vector.broadcast %cst_16 : f32 to vector<32x128xf32>
      %c0_17 = arith.constant 0 : index
      %c0_18 = arith.constant 0 : index
      %27 = vector.load %arg8[%c0_17, %c0_18] : memref<32x128xf32, #tpu.memory_space<vmem>>, vector<32x128xf32>
      tpu.vector_store %arg8[%c0_17, %c0_18], %26 {strides = array<i32>} : memref<32x128xf32, #tpu.memory_space<vmem>>, vector<32x128xf32>,
    } else {
    }
    %c0 = arith.constant 0 : index
    %c0_1 = arith.constant 0 : index
    %c0_2 = arith.constant 0 : index
    %3 = vector.load %arg3[%c0, %c0_1, %c0_2] : memref<1x1x256xf32, #tpu.memory_space<vmem>>, vector<1x1x256xf32>
    %4 = vector.shape_cast %3 : vector<1x1x256xf32> to vector<1x256xf32>
    %c0_3 = arith.constant 0 : index
    %c0_4 = arith.constant 0 : index
    %5 = vector.load %arg4[%c0_3, %c0_4] : memref<32x1xf32, #tpu.memory_space<vmem>>, vector<32x1xf32>
    %c0_5 = arith.constant 0 : index
    %c0_6 = arith.constant 0 : index
    %6 = vector.load %arg5[%c0_5, %c0_6] : memref<32x1xf32, #tpu.memory_space<vmem>>, vector<32x1xf32>
    %7 = vector.broadcast %5 : vector<32x1xf32> to vector<32x256xf32>
    %8 = vector.broadcast %4 : vector<1x256xf32> to vector<32x256xf32>
    %9 = arith.mulf %7, %8 : vector<32x256xf32>
    %10 = vector.broadcast %6 : vector<32x1xf32> to vector<32x256xf32>
    %11 = arith.addf %9, %10 : vector<32x256xf32>
    %cst = arith.constant 0.000000e+00 : f32
    %12 = vector.broadcast %cst : f32 to vector<32x256xf32>
    %13 = arith.maximumf %11, %12 : vector<32x256xf32>
    %c0_7 = arith.constant 0 : index
    %c0_8 = arith.constant 0 : index
    %c0_9 = arith.constant 0 : index
    %14 = vector.load %arg6[%c0_7, %c0_8, %c0_9] : memref<1x32x256xf32, #tpu.memory_space<vmem>>, vector<1x32x256xf32>
    %15 = vector.shape_cast %14 : vector<1x32x256xf32> to vector<32x256xf32>
    %16 = vector.shape_cast %13 : vector<32x256xf32> to vector<1x32x256xf32>
    tpu.vector_store %arg6[%c0_7, %c0_8, %c0_9], %16 {strides = array<i32>} : memref<1x32x256xf32, #tpu.memory_space<vmem>>, vector<1x32x256xf32>,
    %17 = vector.extract_strided_slice %13 {offsets = [0, 0], sizes = [32, 128], strides = [1, 1]} : vector<32x256xf32> to vector<32x128xf32>
    %18 = vector.extract_strided_slice %13 {offsets = [0, 128], sizes = [32, 128], strides = [1, 1]} : vector<32x256xf32> to vector<32x128xf32>
    %19 = arith.addf %17, %18 : vector<32x128xf32>
    %c0_10 = arith.constant 0 : index
    %c0_11 = arith.constant 0 : index
    %20 = vector.load %arg8[%c0_10, %c0_11] : memref<32x128xf32, #tpu.memory_space<vmem>>, vector<32x128xf32>
    %21 = arith.addf %20, %19 : vector<32x128xf32>
    %c0_12 = arith.constant 0 : index
    %c0_13 = arith.constant 0 : index
    %22 = vector.load %arg8[%c0_12, %c0_13] : memref<32x128xf32, #tpu.memory_space<vmem>>, vector<32x128xf32>
    tpu.vector_store %arg8[%c0_12, %c0_13], %21 {strides = array<i32>} : memref<32x128xf32, #tpu.memory_space<vmem>>, vector<32x128xf32>,
    %c0_i32_14 = arith.constant 0 : i32
    %23 = arith.cmpi eq, %arg2, %c0_i32_14 : i32
    %24 = arith.extui %23 : i1 to i32
    %c0_i32_15 = arith.constant 0 : i32
    %25 = arith.cmpi ne, %24, %c0_i32_15 : i32
    scf.if %25 {
      %c0_16 = arith.constant 0 : index
      %c0_17 = arith.constant 0 : index
      %26 = vector.load %arg8[%c0_16, %c0_17] : memref<32x128xf32, #tpu.memory_space<vmem>>, vector<32x128xf32>
      %cst_18 = arith.constant dense<0.000000e+00> : vector<32xf32>
      %27 = vector.multi_reduction <add>, %26, %cst_18 [1] : vector<32x128xf32> to vector<32xf32>
      %28 = vector.shape_cast %27 : vector<32xf32> to vector<32x1xf32>
      %c0_19 = arith.constant 0 : index
      %c0_20 = arith.constant 0 : index
      %c0_21 = arith.constant 0 : index
      %c0_22 = arith.constant 0 : index
      %29 = vector.load %arg7[%c0_19, %c0_20, %c0_21, %c0_22] : memref<1x1x32x1xf32, #tpu.memory_space<vmem>>, vector<1x1x32x1xf32>
      %30 = vector.shape_cast %29 : vector<1x1x32x1xf32> to vector<32x1xf32>
      %31 = vector.shape_cast %28 : vector<32x1xf32> to vector<1x1x32x1xf32>
      tpu.vector_store %arg7[%c0_19, %c0_20, %c0_21, %c0_22], %31 {strides = array<i32>} : memref<1x1x32x1xf32, #tpu.memory_space<vmem>>, vector<1x1x32x1xf32>,
    } else {
    }
    return
  }
  func.func @transform_0(%arg0: i32, %arg1: i32, %arg2: i32) -> (i32, i32, i32) {
    %c1_i32 = arith.constant 1 : i32
    %0 = arith.muli %arg1, %c1_i32 : i32
    %1 = arith.addi %0, %arg2 : i32
    %c0_i32 = arith.constant 0 : i32
    %c0_i32_0 = arith.constant 0 : i32
    return %arg0, %c0_i32, %1 : i32, i32, i32
  }
  func.func @transform_1(%arg0: i32, %arg1: i32, %arg2: i32) -> (i32, i32) {
    %c0_i32 = arith.constant 0 : i32
    %c0_i32_0 = arith.constant 0 : i32
    %c0_i32_1 = arith.constant 0 : i32
    return %c0_i32, %c0_i32_0 : i32, i32
  }
  func.func @transform_2(%arg0: i32, %arg1: i32, %arg2: i32) -> (i32, i32) {
    %c0_i32 = arith.constant 0 : i32
    %c0_i32_0 = arith.constant 0 : i32
    %c0_i32_1 = arith.constant 0 : i32
    return %c0_i32, %c0_i32_0 : i32, i32
  }
  func.func @transform_3(%arg0: i32, %arg1: i32, %arg2: i32) -> (i32, i32, i32) {
    %c1_i32 = arith.constant 1 : i32
    %0 = arith.muli %arg1, %c1_i32 : i32
    %1 = arith.addi %0, %arg2 : i32
    %c0_i32 = arith.constant 0 : i32
    %c0_i32_0 = arith.constant 0 : i32
    return %arg0, %c0_i32, %1 : i32, i32, i32
  }
  func.func @transform_4(%arg0: i32, %arg1: i32, %arg2: i32) -> (i32, i32, i32, i32) {
    %c0_i32 = arith.constant 0 : i32
    %c0_i32_0 = arith.constant 0 : i32
    %c0_i32_1 = arith.constant 0 : i32
    return %arg0, %arg1, %c0_i32, %c0_i32_0 : i32, i32, i32, i32
  }
}

</mosaic_0001>

<bundles_post_ra>
// kernel: tpu_custom_call.1
= control target key start
LH: loop header
LB: loop body
LE: loop exit
PB: predicated region body
PF: predicated region fallthrough
CT: control target
= control target key end

     0   :  { %10 = vsyncpa [#allocation4], 0  ;;  %s874_s0 = inlined_call_operand.vmem [shape: f32[2,1,256], index: 0, kind: input, shape index: {}]   ;;  %s875_s1 = inlined_call_operand.vmem [shape: f32[32,1], index: 1, kind: input, shape index: {}]   ;;  %s876_s2 = inlined_call_operand.vmem [shape: f32[32,1], index: 2, kind: input, shape index: {}]   ;;  %s877_s3 = inlined_call_operand.hbm [shape: f32[2,32,256], index: 3, kind: output, shape index: {0}]   ;;  %s878_s4 = inlined_call_operand.vmem [shape: f32[2,1,32,1], index: 4, kind: output, shape index: {1}]  }
   0x1   :  { %12 = vsyncpa [#allocation4 + $0x1], 0  ;;  %s731_s15 = smov 0   ;;  %s733_s16 = smov 0  }
   0x2   :  { %s735_s17 = smov 0   ;;  %s737_s18 = smov 0  }
   0x3   :  { %s739_s19 = smov 0   ;;  %s741_s20 = smov 0  }
   0x4 LB: > { %s546_s21 = sadd.s32 4294967295, %s701_s20   ;;  %s547_s22 = sadd.s32 4294967294, %s701_s20   ;;  %s701_s20 = sphi %s741_s20, %s18_s20   ;;  %s697_s19 = sphi %s739_s19, %s885_s19   ;;  %s693_s18 = sphi %s737_s18, %s884_s18   ;;  %s689_s17 = sphi %s735_s17, %s883_s17   ;;  %s685_s16 = sphi %s733_s16, %s882_s16   ;;  %s681_s15 = sphi %s731_s15, %s881_s15  }
   0x5   : > { %s37_s23 = sadd.s32 1, %s697_s19  ;;  %s120_s24 = sadd.s32 1, %s689_s17 }
   0x6   : > { %p39_p0 = scmp.ge.s32.totalorder %s37_s23, 2  ;;  %p130_p1 = scmp.ne.s32.totalorder %s689_s17, %s685_s16 }
   0x7   : > { %p131_p2 = scmp.eq.s32.totalorder %s546_s21, 1  ;;  %p136_p3 = scmp.ne.s32.totalorder %s685_s16, %s681_s15 }
   0x8   : > { %s887_s23 = smov (%p39_p0, %s37_s23), 0  ;;  %p137_p5 = scmp.eq.s32.totalorder %s547_s22, 1 }
   0x9   : > { %p771_p4 = por %p131_p2, %p130_p1  ;;  %s115_s26 = ssub.s32 %s697_s19, %s887_s23 }
   0xa   : > { %p550_p6 = scmp.ge.s32.totalorder %s701_s20, 1  ;;  %p118_p7 = scmp.eq.s32.totalorder %s115_s26, 0 }
   0xb   : > { %p778_p8 = por %p137_p5, %p136_p3  ;;  %p203_p9 = scmp.lt.s32.totalorder %s701_s20, 3 }
   0xc   : > { %s784_s28 = scalar_select %p118_p7, %s689_s17, %s120_s24  }
   0xd   : > { %p204_p10 = pnand %p550_p6, %p203_p9 }
   0xe   : > { %p244_p11 = scmp.lt.s32.totalorder (!%p204_p10), %s693_s18, 1  ;;  %s228_s8 = sand.u32 (!%p204_p10), 1, %s685_s16  }
   0xf   : > { %207 = sbr.rel (%p204_p10) target bundleno = 277 (0x115), region = 32  ;;  %s551_s9 = sshll.u32 (!%p204_p10), %s228_s8, 6 }
  0x10   : > { %s821_s10 = scalar_lea.vmem (!%p204_p10), [#allocation3], %s551_s9  ;;  %s561_s11 = sshll.u32 (!%p204_p10), %s693_s18, 6 }
  0x11   : > { %s418_s14 = scalar_lea.hbm (!%p204_p10), %s877_s3, %s561_s11  ;;  %s395_s22 = scalar_lea.sflag (!%p204_p10), [#allocation4], %s228_s8 }
  0x12   : > { %s421_s21 = sshll.u32 (!%p204_p10), %s418_s14, 4  ;;  %s643_s6 = scalar_lea.hbm (!%p204_p10), %s877_s3, 128  ;;  %s422_s21 = int_to_ptr.hbm [resolvable:$true] %s421_s21 }
  0x13   : > { %s637_s24 = sshra.s32 (!%p204_p10), %s422_s21, 4  ;;  %s638_s24 = int_to_ptr.hbm [resolvable:$true] %s637_s24 }
  0x14   : > { %v275_v0 = vld [vmem:[%s875_s1 + $0x10] sm:$0xff]  ;;  %v273_v1 = vld [vmem:[%s875_s1] sm:$0xff]  ;;  %v703_v2 = vmov 0   ;;  %v276_v4 = vld [vmem:[%s875_s1 + $0x18] sm:$0xff]  ;;  %s812_s29 = scalar_select %p244_p11, %s693_s18, 1 }
  0x15   : > { %621 = vset.pattern.permute.xlu1 %v703_v2  ;;  %620 = vset.pattern.permute.xlu0 %v703_v2  ;;  %v277_v3 = vld [vmem:[%s876_s2] sm:$0xff]  ;;  %v274_v5 = vld [vmem:[%s875_s1 + $0x8] sm:$0xff]  ;;  %v280_v7 = vld [vmem:[%s876_s2 + $0x18] sm:$0xff]  ;;  %s419_s18 = sshll.u32 %s821_s10, 4  ;;  %s639_s26 = scalar_lea.hbm %s638_s24, 64  ;;  %s420_s18 = int_to_ptr.vmem [resolvable:$true] %s419_s18 }
  0x16   : > { %293 = vperm.xlu1 %621, %v275_v0   ;;  %283 = vperm.xlu0 %620, %v273_v1   ;;  %v278_v6 = vld [vmem:[%s876_s2 + $0x8] sm:$0xff]  ;;  %v279_v8 = vld [vmem:[%s876_s2 + $0x10] sm:$0xff]  ;;  %s552_s30 = sshll.u32 %s812_s29, 1  ;;  %p640_p12 = scmp.ne.s32.totalorder %s638_s24, %s639_s26 }
  0x17   : > { %622 = vset.pattern.permute.xlu2 %v703_v2  ;;  %s250_s7 = scalar_lea.vmem %s874_s0, %s552_s30  ;;  %p644_p1 = scmp.lt.s32.totalorder %s638_s24, %s877_s3 }
  0x18   : > { %316 = vperm.xlu2 %622, %v277_v3   ;;  %v272_v9 = vld [vmem:[%s250_s7] sm:$0x3]  ;;  %p641_p13 = pnand %p640_p12, %p771_p4  ;;  %p645_p2 = scmp.lt.s32.totalorder %s643_s6, %s639_s26 }
  0x19   : > { %v302_v10 = vperm.slane %v272_v9, 0  ;;  %v303_v11 = vperm.slane %v272_v9, 1 }
  0x1a   : > { %p642_p0 = pneg %p641_p13  ;;  %p646_p3 = por %p645_p2, %p644_p1 }
  0x1c   : > { %p647_p5 = pnand %p646_p3, %p642_p0 }
  0x1e   : > { %298 = vperm.xlu1 %621, %v276_v4   ;;  %288 = vperm.xlu0 %620, %v274_v5  }
  0x20   : > { %321 = vperm.xlu2 %622, %v278_v6  }
  0x26   : > { %331 = vperm.xlu1 %621, %v280_v7   ;;  %326 = vperm.xlu0 %620, %v279_v8  }
  0x72   : > { %v317_v12 = vpop.permute.xlu2 %316 }
  0x7a   : > { %v322_v26 = vpop.permute.xlu2 %321 }
  0x88   : > { %v294_v13 = vpop.permute.xlu1 %293  ;;  %v284_v14 = vpop.permute.xlu0 %283 }
  0x89   : > { %v306_v15 = vmul.f32 %v302_v10, %v284_v14  ;;  %v307_v16 = vmul.f32 %v303_v11, %v284_v14  ;;  %v310_v31 = vmul.f32 %v302_v10, %v294_v13  ;;  %v311_v32 = vmul.f32 %v303_v11, %v294_v13 }
  0x8b   : > { %v334_v17 = vadd.f32 %v317_v12, %v306_v15  ;;  %v335_v18 = vadd.f32 %v317_v12, %v307_v16 }
  0x8d   : > { %v342_v19 = vmax.f32 %v334_v17, 0.0  ;;  %v343_v20 = vmax.f32 %v335_v18, 0.0 }
  0x8f   : > { %v358_v21 = vadd.f32 %v343_v20, %v342_v19  ;;  %350 = vst [vmem:[%s821_s10] sm:$0xff] %v342_v19 }
  0x90   : > { %v299_v22 = vpop.permute.xlu1 %298  ;;  %v289_v23 = vpop.permute.xlu0 %288  ;;  %351 = vst [vmem:[%s821_s10 + $0x8] sm:$0xff] %v343_v20 }
  0x91   : > { %v308_v24 = vmul.f32 %v302_v10, %v289_v23  ;;  %v309_v25 = vmul.f32 %v303_v11, %v289_v23  ;;  %381 = vadd.xlane.f32.xlu2 %v358_v21  ;;  %v312_v33 = vmul.f32 %v302_v10, %v299_v22  ;;  %v313_v34 = vmul.f32 %v303_v11, %v299_v22 }
  0x93   : > { %v336_v27 = vadd.f32 %v322_v26, %v308_v24  ;;  %v337_v28 = vadd.f32 %v322_v26, %v309_v25 }
  0x95   : > { %v344_v29 = vmax.f32 %v336_v27, 0.0  ;;  %v345_v30 = vmax.f32 %v337_v28, 0.0 }
  0x97   : > { %v359_v35 = vadd.f32 %v345_v30, %v344_v29  ;;  %352 = vst [vmem:[%s821_s10 + $0x10] sm:$0xff] %v344_v29 }
  0x98   : > { %v332_v36 = vpop.permute.xlu1 %331  ;;  %v327_v37 = vpop.permute.xlu0 %326  ;;  %353 = vst [vmem:[%s821_s10 + $0x18] sm:$0xff] %v345_v30 }
  0x99   : > { %v340_v38 = vadd.f32 %v332_v36, %v312_v33  ;;  %v341_v39 = vadd.f32 %v332_v36, %v313_v34  ;;  %v338_v40 = vadd.f32 %v327_v37, %v310_v31  ;;  %v339_v41 = vadd.f32 %v327_v37, %v311_v32  ;;  %383 = vadd.xlane.f32.xlu0 %v359_v35 }
  0x9b   : > { %v348_v42 = vmax.f32 %v340_v38, 0.0  ;;  %v349_v43 = vmax.f32 %v341_v39, 0.0  ;;  %v346_v44 = vmax.f32 %v338_v40, 0.0  ;;  %v347_v45 = vmax.f32 %v339_v41, 0.0 }
  0x9d   : > { %356 = vst [vmem:[%s821_s10 + $0x30] sm:$0xff] %v348_v42  ;;  %v360_v46 = vadd.f32 %v347_v45, %v346_v44  ;;  %v361_v47 = vadd.f32 %v349_v43, %v348_v42 }
  0x9e   : > { %357 = vst [vmem:[%s821_s10 + $0x38] sm:$0xff] %v349_v43 }
  0x9f   : > { %354 = vst [vmem:[%s821_s10 + $0x20] sm:$0xff] %v346_v44  ;;  %385 = vadd.xlane.f32.xlu1 %v360_v46  ;;  %387 = vadd.xlane.f32.xlu2 %v361_v47 }
  0xa0   : > { %355 = vst [vmem:[%s821_s10 + $0x28] sm:$0xff] %v347_v45 }
  0xa1   : > { %650 = shalt.err (!%p647_p5)
}
  0xa2   : > { %s704_s8 = smov 256   ;;  %s705_s10 = smov 16   ;;  %vm389_vm0 = vcmask 7168  }
  0xa3   : > { %562 = dma.vmem_to_hbm [thread:$0]  (%p771_p4), %s420_s18, 1024, %s422_s21, %s395_s22, %s704_s8, %s704_s8, %s705_s10  }
  0xa4   : > { %s560_s11 = sshll.u32 %s812_s29, 5 }
  0xa5   : > { %s263_s14 = scalar_lea.vmem %s878_s4, %s560_s11 }
 0x104   : > { %v382_v48 = vpop.xlane.xlu2 %381 }
 0x105   : > { %390 = vst.msk [vmem:[%s263_s14] sm:$0xff] %vm389_vm0, %v382_v48 }
 0x10c   : > { %v384_v49 = vpop.xlane.xlu0 %383 }
 0x10d   : > { %391 = vst.msk [vmem:[%s263_s14 + $0x8] sm:$0xff] %vm389_vm0, %v384_v49 }
 0x112   : > { %v386_v50 = vpop.xlane.xlu1 %385  ;;  %v388_v51 = vpop.xlane.xlu2 %387 }
 0x113   : > { %392 = vst.msk [vmem:[%s263_s14 + $0x10] sm:$0xff] %vm389_vm0, %v386_v50 }
 0x114   : > { %393 = vst.msk [vmem:[%s263_s14 + $0x18] sm:$0xff] %vm389_vm0, %v388_v51 }
 0x115 PF: > { %p568_p6 = scmp.ge.s32.totalorder %s701_s20, 2  ;;  %s439_s25 = sand.u32 1, %s681_s15  }
 0x116   : > { %s440_s29 = scalar_lea.sflag [#allocation4], %s439_s25 }
 0x117   : > { %p565_p4 = pnand %p568_p6, %p778_p8 }
 0x119   : > { %p566_p7 = pneg %p565_p4 }
 0x11b   : > { %676 = dma.done.wait (%p566_p7), %s440_s29, 1024  }
 0x11c   : > { %678 = vsyncadd (%p566_p7), %s440_s29, 4294966272  ;;  %s18_s20 = sadd.s32 1, %s701_s20   ;;  %s881_s15 = smov %s685_s16 }
 0x11d   : > { %p15_p9 = scmp.ge.s32.totalorder %s18_s20, 4   ;;  %s882_s16 = smov %s689_s17 }
 0x11e   : > { %s883_s17 = smov %s784_s28  ;;  %s884_s18 = smov %s697_s19 }
 0x11f   : > { %s885_s19 = smov %s887_s23  ;;  %17 = sbr.rel (!%p15_p9) target bundleno = 4 (0x4), region = 87 }
 0x124   :  { %458 = vsyncpa [#allocation4], 1 }
 0x125   :  { %460 = vsyncpa [#allocation4 + $0x1], 1 }

</bundles_post_ra>
